<compile_context>
chip_gen: v7x
topology: tpu7x:2x2x1
jax: 0.10.0
libtpu: 0.0.40
codegen_flags: <defaults>
</compile_context>

<pallas_src>
import functools

import jax
import jax.numpy as jnp
from jax.experimental import pallas as pl
from jax.experimental.pallas import tpu as pltpu

IN_FEATURES = 10  # 2 (start/end) + 8 (h_w channels)


def _linear_swish_kernel(start_ref, end_ref, hwp_ref, w1se_ref, w2_ref, b2_ref, o_ref):
    # start_ref/end_ref: (1, tf, Lp)       hwp_ref: (1, Lp, H)   (= h_w @ w1[2:] + b1)
    # w1se_ref: (2, H)   w2_ref: (H, H)    b2_ref: (1, H)        o_ref: (1, tf, Lp, H)
    s = start_ref[0].astype(jnp.float32)[..., None]            # (tf, Lp, 1)
    e = end_ref[0].astype(jnp.float32)[..., None]              # (tf, Lp, 1)
    w1se = w1se_ref[...].astype(jnp.float32)                   # (2, H)
    w_s = w1se[0:1, :][None]                                   # (1, 1, H)
    w_e = w1se[1:2, :][None]                                   # (1, 1, H)

    # Fused linear1: start/end are rank-1 VPU updates, h_w term precomputed outside.
    h = s * w_s + e * w_e + hwp_ref[...].astype(jnp.float32)   # (tf, Lp, H), f32
    h = h * jax.nn.sigmoid(h)                                  # SiLU in f32 (EUP)

    tf, lp, hd = h.shape
    h2 = h.reshape(tf * lp, hd).astype(w2_ref.dtype)           # bf16 MXU operand
    y = jnp.dot(h2, w2_ref[...], preferred_element_type=jnp.float32)
    y = y + b2_ref[...].astype(jnp.float32)                    # (tf*lp, H), f32
    o_ref[...] = y.reshape(o_ref.shape).astype(o_ref.dtype)


@functools.partial(jax.jit, static_argnames=("tile_rows", "compute_dtype"))
def linear_swish_forward(start_matrix, end_matrix, h_w, params, *,
                         tile_rows=1024, compute_dtype=jnp.bfloat16):
    """start_matrix/end_matrix: (B, Lf, Lp); h_w: (B, 8, Lp); params: dict."""
    w1, b1, w2, b2 = params["w1"], params["b1"], params["w2"], params["b2"]
    B, Lf, Lp = start_matrix.shape
    H = w1.shape[1]
    assert w1.shape[0] == IN_FEATURES

    # L_frame-invariant part of linear1, computed once (tiny): (B, Lp, H), f32.
    hw_proj = jnp.einsum(
        "bcp,ch->bph", h_w.astype(jnp.float32), w1[2:].astype(jnp.float32),
        precision=jax.lax.Precision.HIGHEST) + b1.astype(jnp.float32)

    w1se = w1[:2, :].astype(jnp.float32)     # start/end rows of w1 (VPU path, f32)
    w2c = w2.astype(compute_dtype)           # MXU operand (bf16 halves weight traffic)
    b2f = b2.astype(jnp.float32)

    # Frames per grid step: aim for ~tile_rows rows of the (rows, H) matmul while
    # respecting the (8, 128) sublane rule on the (tf, Lp) start/end blocks.
    frames = max(1, tile_rows // max(Lp, 1))
    if frames >= Lf:
        tf = Lf
    else:
        tf = min(Lf, max(8, (frames // 8) * 8))
    nf = pl.cdiv(Lf, tf)

    # TODO(synk): for production configs with H < 128 a lane-dense (rows/k, k*H)
    # output view would further cut masked stores; kept H-minor here for robustness.
    out = pl.pallas_call(
        _linear_swish_kernel,
        out_shape=jax.ShapeDtypeStruct((B, Lf, Lp, H), start_matrix.dtype),
        grid_spec=pltpu.PrefetchScalarGridSpec(
            num_scalar_prefetch=0,
            grid=(B, nf),
            in_specs=[
                pl.BlockSpec((1, tf, Lp), lambda b, i: (b, i, 0)),   # start
                pl.BlockSpec((1, tf, Lp), lambda b, i: (b, i, 0)),   # end
                pl.BlockSpec((1, Lp, H), lambda b, i: (b, 0, 0)),    # hw_proj (+b1)
                pl.BlockSpec((2, H), lambda b, i: (0, 0)),           # w1[:2]
                pl.BlockSpec((H, H), lambda b, i: (0, 0)),           # w2
                pl.BlockSpec((1, H), lambda b, i: (0, 0)),           # b2
            ],
            out_specs=pl.BlockSpec((1, tf, Lp, H), lambda b, i: (b, i, 0, 0)),
        ),
        compiler_params=pltpu.CompilerParams(
            dimension_semantics=("parallel", "parallel")),
    )(start_matrix, end_matrix, hw_proj, w1se, w2c, b2f)
    return out


def init_params(key, in_features, out_features, dtype=jnp.float32):
    """Deterministic init matching nn.Linear shapes (weights stored transposed)."""
    k1, k2, k3, k4 = jax.random.split(key, 4)
    lim1 = 1.0 / jnp.sqrt(in_features)
    lim2 = 1.0 / jnp.sqrt(out_features)
    return {
        "w1": jax.random.uniform(k1, (in_features, out_features), dtype, -lim1, lim1),
        "b1": jax.random.uniform(k2, (1, out_features), dtype, -lim1, lim1),
        "w2": jax.random.uniform(k3, (out_features, out_features), dtype, -lim2, lim2),
        "b2": jax.random.uniform(k4, (1, out_features), dtype, -lim2, lim2),
    }


def _reference_forward(start_matrix, end_matrix, h_w, params):
    """Pure-JAX f32 reference matching the PyTorch module."""
    B, Lf, Lp = start_matrix.shape
    hw_t = jnp.transpose(h_w, (0, 2, 1))
    hw_b = jnp.broadcast_to(hw_t[:, None, :, :], (B, Lf, Lp, 8))
    x = jnp.concatenate([start_matrix[..., None], end_matrix[..., None], hw_b], -1)
    h = x @ params["w1"] + params["b1"][0]
    h = h * jax.nn.sigmoid(h)
    return h @ params["w2"] + params["b2"][0]


if __name__ == "__main__":
    key = jax.random.PRNGKey(0)
    B, Lf, Lp, H = 2, 8, 16, 32  # batch, L_frame, L_phone, out_features

    ks, ke, kh, kp = jax.random.split(key, 4)
    start_matrix = jax.random.normal(ks, (B, Lf, Lp), jnp.float32)
    end_matrix = jax.random.normal(ke, (B, Lf, Lp), jnp.float32)
    h_w = jax.random.normal(kh, (B, 8, Lp), jnp.float32)

    params = init_params(kp, IN_FEATURES, H)

    out = linear_swish_forward(start_matrix, end_matrix, h_w, params)
    out = jax.block_until_ready(out)

    ref = _reference_forward(start_matrix, end_matrix, h_w, params)
    assert out.shape == (B, Lf, Lp, H), out.shape
    # bf16 MXU operands vs f32 reference -> expected small mixed-precision delta.
    assert jnp.allclose(out, ref, atol=5e-2, rtol=5e-2), float(
        jnp.max(jnp.abs(out - ref)))

    print("KERNEL_OK")
</pallas_src>

<mosaic_0001>
module attributes {stable_mosaic.version = 11 : i64} {
  func.func @_linear_swish_kernel(%arg0: i32, %arg1: i32, %arg2: memref<1x8x16xf32, #tpu.memory_space<vmem>>, %arg3: memref<1x8x16xf32, #tpu.memory_space<vmem>>, %arg4: memref<1x16x32xf32, #tpu.memory_space<vmem>>, %arg5: memref<2x32xf32, #tpu.memory_space<vmem>>, %arg6: memref<32x32xbf16, #tpu.memory_space<vmem>>, %arg7: memref<1x32xf32, #tpu.memory_space<vmem>>, %arg8: memref<1x8x16x32xf32, #tpu.memory_space<vmem>>) attributes {dimension_semantics = [#tpu.dimension_semantics<parallel>, #tpu.dimension_semantics<parallel>], iteration_bounds = array<i64: 2, 1>, scalar_prefetch = 0 : i64, scratch_operands = 0 : i64, tpu.core_type = #tpu.core_type<tc>, window_params = [{transform_indices = @transform_0, window_bounds = array<i64: 1, 8, 16>}, {transform_indices = @transform_1, window_bounds = array<i64: 1, 8, 16>}, {transform_indices = @transform_2, window_bounds = array<i64: 1, 16, 32>}, {pipeline_mode = #tpu.pipeline_mode<synchronous>, transform_indices = @transform_3, window_bounds = array<i64: 2, 32>}, {pipeline_mode = #tpu.pipeline_mode<synchronous>, transform_indices = @transform_4, window_bounds = array<i64: 32, 32>}, {pipeline_mode = #tpu.pipeline_mode<synchronous>, transform_indices = @transform_5, window_bounds = array<i64: 1, 32>}, {transform_indices = @transform_6, window_bounds = array<i64: 1, 8, 16, 32>}]} {
    %c0 = arith.constant 0 : index
    %c0_0 = arith.constant 0 : index
    %c0_1 = arith.constant 0 : index
    %0 = vector.load %arg2[%c0, %c0_0, %c0_1] : memref<1x8x16xf32, #tpu.memory_space<vmem>>, vector<1x8x16xf32>
    %1 = vector.shape_cast %0 : vector<1x8x16xf32> to vector<8x16xf32>
    %2 = vector.shape_cast %1 : vector<8x16xf32> to vector<8x16x1xf32>
    %c0_2 = arith.constant 0 : index
    %c0_3 = arith.constant 0 : index
    %c0_4 = arith.constant 0 : index
    %3 = vector.load %arg3[%c0_2, %c0_3, %c0_4] : memref<1x8x16xf32, #tpu.memory_space<vmem>>, vector<1x8x16xf32>
    %4 = vector.shape_cast %3 : vector<1x8x16xf32> to vector<8x16xf32>
    %5 = vector.shape_cast %4 : vector<8x16xf32> to vector<8x16x1xf32>
    %c0_5 = arith.constant 0 : index
    %c0_6 = arith.constant 0 : index
    %6 = vector.load %arg5[%c0_5, %c0_6] : memref<2x32xf32, #tpu.memory_space<vmem>>, vector<2x32xf32>
    %7 = vector.extract_strided_slice %6 {offsets = [0, 0], sizes = [1, 32], strides = [1, 1]} : vector<2x32xf32> to vector<1x32xf32>
    %8 = vector.shape_cast %7 : vector<1x32xf32> to vector<1x1x32xf32>
    %9 = vector.extract_strided_slice %6 {offsets = [1, 0], sizes = [1, 32], strides = [1, 1]} : vector<2x32xf32> to vector<1x32xf32>
    %10 = vector.shape_cast %9 : vector<1x32xf32> to vector<1x1x32xf32>
    %11 = vector.broadcast %2 : vector<8x16x1xf32> to vector<8x16x32xf32>
    %12 = vector.broadcast %8 : vector<1x1x32xf32> to vector<8x16x32xf32>
    %13 = arith.mulf %11, %12 : vector<8x16x32xf32>
    %14 = vector.broadcast %5 : vector<8x16x1xf32> to vector<8x16x32xf32>
    %15 = vector.broadcast %10 : vector<1x1x32xf32> to vector<8x16x32xf32>
    %16 = arith.mulf %14, %15 : vector<8x16x32xf32>
    %17 = arith.addf %13, %16 : vector<8x16x32xf32>
    %c0_7 = arith.constant 0 : index
    %c0_8 = arith.constant 0 : index
    %c0_9 = arith.constant 0 : index
    %18 = vector.load %arg4[%c0_7, %c0_8, %c0_9] : memref<1x16x32xf32, #tpu.memory_space<vmem>>, vector<1x16x32xf32>
    %19 = vector.broadcast %18 : vector<1x16x32xf32> to vector<8x16x32xf32>
    %20 = arith.addf %17, %19 : vector<8x16x32xf32>
    %21 = arith.negf %20 : vector<8x16x32xf32>
    %22 = math.exp %21 : vector<8x16x32xf32>
    %cst = arith.constant 1.000000e+00 : f32
    %23 = vector.broadcast %cst : f32 to vector<8x16x32xf32>
    %24 = arith.addf %23, %22 : vector<8x16x32xf32>
    %25 = arith.divf %23, %24 : vector<8x16x32xf32>
    %26 = arith.mulf %20, %25 : vector<8x16x32xf32>
    %27 = vector.shape_cast %26 : vector<8x16x32xf32> to vector<128x32xf32>
    %28 = arith.truncf %27 : vector<128x32xf32> to vector<128x32xbf16>
    %c0_10 = arith.constant 0 : index
    %c0_11 = arith.constant 0 : index
    %29 = vector.load %arg6[%c0_10, %c0_11] : memref<32x32xbf16, #tpu.memory_space<vmem>>, vector<32x32xbf16>
    %cst_12 = arith.constant dense<0.000000e+00> : vector<128x32xf32>
    %30 = tpu.matmul %28, %29, %cst_12 {dimension_numbers = #tpu.dot_dimension_numbers<[1], [0], [0], [1], [0, 0, 1, 1], [], []>} : vector<128x32xbf16>, vector<32x32xbf16>, vector<128x32xf32> -> vector<128x32xf32>
    %c0_13 = arith.constant 0 : index
    %c0_14 = arith.constant 0 : index
    %31 = vector.load %arg7[%c0_13, %c0_14] : memref<1x32xf32, #tpu.memory_space<vmem>>, vector<1x32xf32>
    %32 = vector.broadcast %31 : vector<1x32xf32> to vector<128x32xf32>
    %33 = arith.addf %30, %32 : vector<128x32xf32>
    %34 = vector.shape_cast %33 : vector<128x32xf32> to vector<1x8x16x32xf32>
    %c0_15 = arith.constant 0 : index
    %c0_16 = arith.constant 0 : index
    %c0_17 = arith.constant 0 : index
    %c0_18 = arith.constant 0 : index
    %35 = vector.load %arg8[%c0_15, %c0_16, %c0_17, %c0_18] : memref<1x8x16x32xf32, #tpu.memory_space<vmem>>, vector<1x8x16x32xf32>
    tpu.vector_store %arg8[%c0_15, %c0_16, %c0_17, %c0_18], %34 {strides = array<i32>} : memref<1x8x16x32xf32, #tpu.memory_space<vmem>>, vector<1x8x16x32xf32>,
    return
  }
  func.func @transform_0(%arg0: i32, %arg1: i32) -> (i32, i32, i32) {
    %c0_i32 = arith.constant 0 : i32
    %c0_i32_0 = arith.constant 0 : i32
    return %arg0, %arg1, %c0_i32 : i32, i32, i32
  }
  func.func @transform_1(%arg0: i32, %arg1: i32) -> (i32, i32, i32) {
    %c0_i32 = arith.constant 0 : i32
    %c0_i32_0 = arith.constant 0 : i32
    return %arg0, %arg1, %c0_i32 : i32, i32, i32
  }
  func.func @transform_2(%arg0: i32, %arg1: i32) -> (i32, i32, i32) {
    %c0_i32 = arith.constant 0 : i32
    %c0_i32_0 = arith.constant 0 : i32
    %c0_i32_1 = arith.constant 0 : i32
    return %arg0, %c0_i32, %c0_i32_0 : i32, i32, i32
  }
  func.func @transform_3(%arg0: i32, %arg1: i32) -> (i32, i32) {
    %c0_i32 = arith.constant 0 : i32
    %c0_i32_0 = arith.constant 0 : i32
    %c0_i32_1 = arith.constant 0 : i32
    return %c0_i32, %c0_i32_0 : i32, i32
  }
  func.func @transform_4(%arg0: i32, %arg1: i32) -> (i32, i32) {
    %c0_i32 = arith.constant 0 : i32
    %c0_i32_0 = arith.constant 0 : i32
    %c0_i32_1 = arith.constant 0 : i32
    return %c0_i32, %c0_i32_0 : i32, i32
  }
  func.func @transform_5(%arg0: i32, %arg1: i32) -> (i32, i32) {
    %c0_i32 = arith.constant 0 : i32
    %c0_i32_0 = arith.constant 0 : i32
    %c0_i32_1 = arith.constant 0 : i32
    return %c0_i32, %c0_i32_0 : i32, i32
  }
  func.func @transform_6(%arg0: i32, %arg1: i32) -> (i32, i32, i32, i32) {
    %c0_i32 = arith.constant 0 : i32
    %c0_i32_0 = arith.constant 0 : i32
    %c0_i32_1 = arith.constant 0 : i32
    return %arg0, %arg1, %c0_i32, %c0_i32_0 : i32, i32, i32, i32
  }
}

</mosaic_0001>

<bundles_post_ra>
// kernel: linear_swish_forward.1
= control target key start
LH: loop header
LB: loop body
LE: loop exit
PB: predicated region body
PF: predicated region fallthrough
CT: control target
= control target key end

     0   :  { %11 = vsyncpa [#allocation3], 0  ;;  %s1598_s0 = inlined_call_operand.vmem [shape: f32[2,8,16], index: 0, kind: input, shape index: {}]   ;;  %s1599_s1 = inlined_call_operand.vmem [shape: f32[2,8,16], index: 1, kind: input, shape index: {}]   ;;  %s1600_s2 = inlined_call_operand.vmem [shape: f32[2,16,32], index: 2, kind: input, shape index: {}]   ;;  %s1601_s3 = inlined_call_operand.vmem [shape: f32[2,32], index: 3, kind: input, shape index: {}]   ;;  %s1602_s4 = inlined_call_operand.vmem [shape: bf16[32,32], index: 4, kind: input, shape index: {}]   ;;  %s1603_s5 = inlined_call_operand.vmem [shape: f32[1,32], index: 5, kind: input, shape index: {}]   ;;  %s1604_s6 = inlined_call_operand.hbm [shape: f32[2,8,16,32], index: 6, kind: output, shape index: {}]  }
   0x1   :  { %13 = vsyncpa [#allocation3 + $0x1], 0  ;;  %s1295_s21 = smov 0   ;;  %s1297_s22 = smov 0  }
   0x2   :  { %s1299_s23 = smov 0   ;;  %s1301_s24 = smov 0  }
   0x3   :  { %s1303_s25 = smov 0   ;;  %s1305_s26 = smov 0  }
   0x4 LB: > { %s976_s27 = sadd.s32 4294967295, %s1255_s26   ;;  %s977_s28 = sadd.s32 4294967294, %s1255_s26   ;;  %s1255_s26 = sphi %s1305_s26, %s19_s26   ;;  %s1251_s25 = sphi %s1303_s25, %s1611_s25   ;;  %s1247_s24 = sphi %s1301_s24, %s1610_s24   ;;  %s1243_s23 = sphi %s1299_s23, %s1609_s23   ;;  %s1239_s22 = sphi %s1297_s22, %s1608_s22   ;;  %s1235_s21 = sphi %s1295_s21, %s1607_s21  }
   0x5   : > { %s31_s29 = sadd.s32 1, %s1251_s25  ;;  %s185_s30 = sadd.s32 1, %s1243_s23 }
   0x6   : > { %p33_p0 = scmp.ge.s32.totalorder %s31_s29, 2  ;;  %p195_p1 = scmp.ne.s32.totalorder %s1243_s23, %s1239_s22 }
   0x7   : > { %p196_p2 = scmp.eq.s32.totalorder %s976_s27, 1  ;;  %p201_p3 = scmp.ne.s32.totalorder %s1239_s22, %s1235_s21 }
   0x8   : > { %s1613_s29 = smov (%p33_p0, %s31_s29), 0  ;;  %p202_p5 = scmp.eq.s32.totalorder %s977_s28, 1 }
   0x9   : > { %p1335_p4 = por %p196_p2, %p195_p1  ;;  %s180_s8 = ssub.s32 %s1251_s25, %s1613_s29 }
   0xa   : > { %p980_p6 = scmp.ge.s32.totalorder %s1255_s26, 1  ;;  %p183_p7 = scmp.eq.s32.totalorder %s180_s8, 0 }
   0xb   : > { %p1342_p8 = por %p202_p5, %p201_p3  ;;  %p257_p9 = scmp.lt.s32.totalorder %s1255_s26, 3 }
   0xc   : > { %s1348_s10 = scalar_select %p183_p7, %s1243_s23, %s185_s30  }
   0xd   : > { %p258_p10 = pnand %p980_p6, %p257_p9 }
   0xe   : > { %p301_p11 = scmp.lt.s32.totalorder (!%p258_p10), %s1247_s24, 1  ;;  %v323_v0 = vlaneseq (!%p258_p10)  ;;  %v1111_v23 = vld [vmem:[%s1602_s4] sm:$0xff] (!%p258_p10)   ;;  %v1112_v26 = vld [vmem:[%s1602_s4 + $0x8] sm:$0xff] (!%p258_p10)   ;;  %vm718_vm0 = vcmask (!%p258_p10), 261120   ;;  %s1019_s20 = sshll.u32 (!%p258_p10), %s1247_s24, 11 }
   0xf   : > { %261 = sbr.rel (%p258_p10) target bundleno = 475 (0x1db), region = 44  ;;  %1030 = vmatprep.subr.bf16.mxu0 (!%p258_p10), %v1111_v23  ;;  %1050 = vmatprep.subr.bf16.mxu1 (!%p258_p10), %v1111_v23  ;;  %v500_v32 = vld [vmem:[%s1601_s3] sm:$0x3] (!%p258_p10)  ;;  %s1538_s30 = scalar_lea.hbm (!%p258_p10), %s1604_s6, %s1019_s20 }
  0x10   : > { %v1354_v1 = vshrl.u32 (!%p258_p10), %v323_v0, 7  ;;  %1031 = vmatpush3.bf16.msra.mxu0 (!%p258_p10), %v1111_v23  ;;  %1052 = vmatpush3.bf16.msra.mxu1 (!%p258_p10), %v1111_v23  ;;  %s1257_s13 = smov (!%p258_p10), [#allocation2]  }
  0x11   : > { %1032 = vmatprep.subr.bf16.mxu0 (!%p258_p10), %v1112_v26  ;;  %1051 = vmatprep.subr.bf16.mxu1 (!%p258_p10), %v1112_v26  ;;  %s1181_s14 = sshll.u32 (!%p258_p10), %s1257_s13, 4  ;;  %s1182_s14 = int_to_ptr.vmem [resolvable:$false] %s1181_s14 }
  0x12   : > { %v369_v2 = vsub.s32 (!%p258_p10), 4, %v1354_v1  ;;  %v1359_v3 = vsub.s32 (!%p258_p10), 0, %v1354_v1  ;;  %v336_v10 = vsub.s32 (!%p258_p10), 1, %v1354_v1  ;;  %v380_v12 = vsub.s32 (!%p258_p10), 5, %v1354_v1 }
  0x13   : > { %v347_v16 = vsub.s32 (!%p258_p10), 2, %v1354_v1  ;;  %v391_v18 = vsub.s32 (!%p258_p10), 6, %v1354_v1  ;;  %v358_v22 = vsub.s32 (!%p258_p10), 3, %v1354_v1  ;;  %v402_v25 = vsub.s32 (!%p258_p10), 7, %v1354_v1 }
  0x14   : > { %1033 = vmatpush3.bf16.msra.mxu0 (!%p258_p10), %v1112_v26  ;;  %1053 = vmatpush3.bf16.msra.mxu1 (!%p258_p10), %v1112_v26  ;;  %v1386_v35 = vrot.slane (!%p258_p10), %v500_v32, %v1359_v3  ;;  %v1388_v36 = vrot.slane (!%p258_p10), %v500_v32, %v336_v10 }
  0x16   : > { %s1352_s11 = scalar_select %p301_p11, %s1247_s24, 1 }
  0x18   : > { %s982_s12 = sshll.u32 %s1352_s11, 3 }
  0x19   : > { %s307_s15 = scalar_lea.vmem %s1598_s0, %s982_s12  ;;  %s314_s18 = scalar_lea.vmem %s1599_s1, %s982_s12 }
  0x1a   : > { %v322_v4 = vld [vmem:[%s307_s15] sm:$0xff]  ;;  %s1018_s12 = sshll.u32 %s1352_s11, 4  ;;  %s298_s11 = sand.u32 1, %s1239_s22  }
  0x1b   : > { %v370_v5 = vrot.slane %v322_v4, %v369_v2  ;;  %v326_v6 = vrot.slane %v322_v4, %v1359_v3  ;;  %v411_v7 = vld [vmem:[%s314_s18] sm:$0xff]  ;;  %v337_v11 = vrot.slane %v322_v4, %v336_v10  ;;  %v381_v13 = vrot.slane %v322_v4, %v380_v12  ;;  %s319_s15 = scalar_lea.vmem %s1600_s2, %s1018_s12  ;;  %s981_s16 = sshll.u32 %s298_s11, 7 }
  0x1c   : > { %v415_v8 = vrot.slane %v411_v7, %v1359_v3  ;;  %v459_v9 = vrot.slane %v411_v7, %v369_v2  ;;  %v426_v14 = vrot.slane %v411_v7, %v336_v10  ;;  %v470_v15 = vrot.slane %v411_v7, %v380_v12  ;;  %v1397_v43 = vld [vmem:[%s319_s15 + $0x8] sm:$0xff]  ;;  %v1399_v44 = vld [vmem:[%s319_s15] sm:$0xff]  ;;  %s1507_s19 = scalar_lea.vmem [#allocation2], %s981_s16  ;;  %s1552_s8 = scalar_lea.sflag [#allocation3], %s298_s11 }
  0x1d   : > { %372 = vbcast.lane.b32.xlu1 %v370_v5, 256  ;;  %328 = vbcast.lane.b32.xlu0 %v326_v6, 256  ;;  %v348_v17 = vrot.slane %v322_v4, %v347_v16  ;;  %v392_v19 = vrot.slane %v322_v4, %v391_v18  ;;  %v437_v20 = vrot.slane %v411_v7, %v347_v16  ;;  %s873_s27 = sshll.u32 %s1507_s19, 4  ;;  %s1183_s15 = scalar_lea.vmem %s1182_s14, 4096  ;;  %s1540_s27 = int_to_ptr.vmem [resolvable:$true] %s873_s27 }
  0x1e   : > { %v481_v21 = vrot.slane %v411_v7, %v391_v18  ;;  %v359_v24 = vrot.slane %v322_v4, %v358_v22  ;;  %v403_v27 = vrot.slane %v322_v4, %v402_v25  ;;  %v448_v28 = vrot.slane %v411_v7, %v358_v22  ;;  %s1177_s12 = scalar_lea.vmem %s1540_s27, 2048  ;;  %p1184_p1 = scmp.lt.s32.totalorder %s1540_s27, %s1182_s14 }
  0x1f   : > { %v492_v29 = vrot.slane %v411_v7, %v402_v25  ;;  %p1178_p12 = scmp.ne.s32.totalorder %s1540_s27, %s1177_s12  ;;  %p1185_p2 = scmp.lt.s32.totalorder %s1183_s15, %s1177_s12 }
  0x21   : > { %376 = vbcast.lane.b32.xlu1 %v370_v5, 264  ;;  %332 = vbcast.lane.b32.xlu0 %v326_v6, 264  ;;  %p1179_p13 = pnand %p1178_p12, %p1335_p4  ;;  %p1186_p3 = por %p1185_p2, %p1184_p1 }
  0x23   : > { %p1180_p0 = pneg %p1179_p13 }
  0x25   : > { %421 = vbcast.lane.b32.xlu1 %v415_v8, 264  ;;  %417 = vbcast.lane.b32.xlu0 %v415_v8, 256  ;;  %p1187_p5 = pnand %p1186_p3, %p1180_p0 }
  0x29   : > { %465 = vbcast.lane.b32.xlu1 %v459_v9, 264  ;;  %461 = vbcast.lane.b32.xlu0 %v459_v9, 256 }
  0x2d   : > { %343 = vbcast.lane.b32.xlu1 %v337_v11, 264  ;;  %339 = vbcast.lane.b32.xlu0 %v337_v11, 256 }
  0x31   : > { %387 = vbcast.lane.b32.xlu1 %v381_v13, 264  ;;  %383 = vbcast.lane.b32.xlu0 %v381_v13, 256 }
  0x35   : > { %432 = vbcast.lane.b32.xlu1 %v426_v14, 264  ;;  %428 = vbcast.lane.b32.xlu0 %v426_v14, 256 }
  0x39   : > { %476 = vbcast.lane.b32.xlu1 %v470_v15, 264  ;;  %472 = vbcast.lane.b32.xlu0 %v470_v15, 256 }
  0x3d   : > { %354 = vbcast.lane.b32.xlu1 %v348_v17, 264  ;;  %350 = vbcast.lane.b32.xlu0 %v348_v17, 256 }
  0x41   : > { %398 = vbcast.lane.b32.xlu1 %v392_v19, 264  ;;  %394 = vbcast.lane.b32.xlu0 %v392_v19, 256 }
  0x45   : > { %443 = vbcast.lane.b32.xlu1 %v437_v20, 264  ;;  %439 = vbcast.lane.b32.xlu0 %v437_v20, 256 }
  0x49   : > { %487 = vbcast.lane.b32.xlu1 %v481_v21, 264  ;;  %483 = vbcast.lane.b32.xlu0 %v481_v21, 256 }
  0x4d   : > { %365 = vbcast.lane.b32.xlu1 %v359_v24, 264  ;;  %361 = vbcast.lane.b32.xlu0 %v359_v24, 256 }
  0x51   : > { %409 = vbcast.lane.b32.xlu1 %v403_v27, 264  ;;  %405 = vbcast.lane.b32.xlu0 %v403_v27, 256 }
  0x55   : > { %454 = vbcast.lane.b32.xlu1 %v448_v28, 264  ;;  %450 = vbcast.lane.b32.xlu0 %v448_v28, 256 }
  0x59   : > { %498 = vbcast.lane.b32.xlu1 %v492_v29, 264  ;;  %494 = vbcast.lane.b32.xlu0 %v492_v29, 256 }
  0x8f   : > { %v373_v30 = vpop.permute.xlu1 %372  ;;  %v329_v31 = vpop.permute.xlu0 %328 }
  0x90   : > { %v505_v39 = vmul.f32 %v1386_v35, %v329_v31  ;;  %v513_v47 = vmul.f32 %v1386_v35, %v373_v30 }
  0x93   : > { %v377_v33 = vpop.permute.xlu1 %376  ;;  %v333_v34 = vpop.permute.xlu0 %332 }
  0x94   : > { %v506_v40 = vmul.f32 %v1386_v35, %v333_v34  ;;  %v514_v48 = vmul.f32 %v1386_v35, %v377_v33 }
  0x97   : > { %v422_v37 = vpop.permute.xlu1 %421  ;;  %v418_v38 = vpop.permute.xlu0 %417 }
  0x98   : > { %v526_v41 = vmul.f32 %v1388_v36, %v422_v37  ;;  %v525_v42 = vmul.f32 %v1388_v36, %v418_v38 }
  0x9a   : > { %v542_v45 = vadd.f32 %v526_v41, %v506_v40  ;;  %v541_v46 = vadd.f32 %v525_v42, %v505_v39 }
  0x9b   : > { %v466_v49 = vpop.permute.xlu1 %465  ;;  %v462_v50 = vpop.permute.xlu0 %461 }
  0x9c   : > { %v1404_v51 = vadd.f32 %v1397_v43, %v542_v45  ;;  %v1407_v52 = vadd.f32 %v1399_v44, %v541_v46  ;;  %v534_v53 = vmul.f32 %v1388_v36, %v466_v49  ;;  %v533_v54 = vmul.f32 %v1388_v36, %v462_v50 }
  0x9e   : > { %v987_v55 = vmul.f32 -1.442695, %v1404_v51  ;;  %v986_v56 = vmul.f32 -1.442695, %v1407_v52  ;;  %v550_v57 = vadd.f32 %v534_v53, %v514_v48  ;;  %v549_v58 = vadd.f32 %v533_v54, %v513_v47 }
  0x9f   : > { %v344_v59 = vpop.permute.xlu1 %343  ;;  %v340_v60 = vpop.permute.xlu0 %339 }
  0xa0   : > { %1113 = vpow2.f32 %v987_v55  ;;  %v1414_v61 = vadd.f32 %v1397_v43, %v550_v57  ;;  %v1417_v62 = vadd.f32 %v1399_v44, %v549_v58  ;;  %v508_v5 = vmul.f32 %v1386_v35, %v344_v59 }
  0xa1   : > { %1115 = vpow2.f32 %v986_v56  ;;  %v507_v6 = vmul.f32 %v1386_v35, %v340_v60 }
  0xa2   : > { %v995_v63 = vmul.f32 -1.442695, %v1414_v61  ;;  %v994_v0 = vmul.f32 -1.442695, %v1417_v62 }
  0xa3   : > { %v388_v1 = vpop.permute.xlu1 %387  ;;  %v384_v2 = vpop.permute.xlu0 %383 }
  0xa4   : > { %1117 = vpow2.f32 %v995_v63  ;;  %v516_v14 = vmul.f32 %v1386_v35, %v388_v1  ;;  %v515_v21 = vmul.f32 %v1386_v35, %v384_v2 }
  0xa5   : > { %1119 = vpow2.f32 %v994_v0 }
  0xa7   : > { %v433_v3 = vpop.permute.xlu1 %432  ;;  %v429_v4 = vpop.permute.xlu0 %428 }
  0xa8   : > { %v528_v7 = vmul.f32 %v1388_v36, %v433_v3  ;;  %v527_v8 = vmul.f32 %v1388_v36, %v429_v4 }
  0xaa   : > { %v1114_v9 = vpop.eup %1113  ;;  %v544_v10 = vadd.f32 %v528_v7, %v508_v5  ;;  %v543_v11 = vadd.f32 %v527_v8, %v507_v6 }
  0xab   : > { %v1116_v12 = vpop.eup %1115  ;;  %v624_v13 = vadd.f32 1.0, %v1114_v9  ;;  %v477_v15 = vpop.permute.xlu1 %476 }
  0xac   : > { %v473_v16 = vpop.permute.xlu0 %472  ;;  %v623_v17 = vadd.f32 1.0, %v1116_v12  ;;  %v1427_v18 = vadd.f32 %v1397_v43, %v544_v10  ;;  %v1430_v19 = vadd.f32 %v1399_v44, %v543_v11  ;;  %v536_v20 = vmul.f32 %v1388_v36, %v477_v15 }
  0xad   : > { %1121 = vrcp.f32 %v624_v13  ;;  %v535_v22 = vmul.f32 %v1388_v36, %v473_v16 }
  0xae   : > { %v1118_v23 = vpop.eup %1117  ;;  %1123 = vrcp.f32 %v623_v17  ;;  %v989_v24 = vmul.f32 -1.442695, %v1427_v18  ;;  %v552_v25 = vadd.f32 %v536_v20, %v516_v14  ;;  %v988_v28 = vmul.f32 -1.442695, %v1430_v19 }
  0xaf   : > { %v1120_v26 = vpop.eup %1119  ;;  %v632_v27 = vadd.f32 1.0, %v1118_v23  ;;  %v551_v29 = vadd.f32 %v535_v22, %v515_v21  ;;  %v355_v30 = vpop.permute.xlu1 %354 }
  0xb0   : > { %v351_v31 = vpop.permute.xlu0 %350  ;;  %v631_v32 = vadd.f32 1.0, %v1120_v26  ;;  %1125 = vpow2.f32 %v989_v24  ;;  %v1438_v33 = vadd.f32 %v1397_v43, %v552_v25  ;;  %v510_v42 = vmul.f32 %v1386_v35, %v355_v30 }
  0xb1   : > { %1127 = vrcp.f32 %v632_v27  ;;  %v1441_v34 = vadd.f32 %v1399_v44, %v551_v29  ;;  %v509_v48 = vmul.f32 %v1386_v35, %v351_v31 }
  0xb2   : > { %1129 = vrcp.f32 %v631_v32  ;;  %v997_v37 = vmul.f32 -1.442695, %v1438_v33 }
  0xb3   : > { %1131 = vpow2.f32 %v988_v28  ;;  %v996_v38 = vmul.f32 -1.442695, %v1441_v34  ;;  %v399_v39 = vpop.permute.xlu1 %398 }
  0xb4   : > { %v395_v40 = vpop.permute.xlu0 %394  ;;  %1133 = vpow2.f32 %v997_v37  ;;  %v518_v60 = vmul.f32 %v1386_v35, %v399_v39 }
  0xb5   : > { %1135 = vpow2.f32 %v996_v38  ;;  %v517_v6 = vmul.f32 %v1386_v35, %v395_v40 }
  0xb7   : > { %v1122_v41 = vpop.eup %1121  ;;  %v444_v45 = vpop.permute.xlu1 %443 }
  0xb8   : > { %v440_v46 = vpop.permute.xlu0 %439  ;;  %v1124_v47 = vpop.eup %1123  ;;  %v530_v49 = vmul.f32 %v1388_v36, %v444_v45  ;;  %v672_v53 = vmul.f32 %v1122_v41, %v1404_v51 }
  0xb9   : > { %v529_v50 = vmul.f32 %v1388_v36, %v440_v46  ;;  %v671_v54 = vmul.f32 %v1124_v47, %v1407_v52 }
  0xba   : > { %v1126_v55 = vpop.eup %1125  ;;  %v546_v56 = vadd.f32 %v530_v49, %v510_v42 }
  0xbb   : > { %v545_v57 = vadd.f32 %v529_v50, %v509_v48  ;;  %v1128_v58 = vpop.eup %1127  ;;  %v626_v59 = vadd.f32 1.0, %v1126_v55  ;;  %v488_v63 = vpop.permute.xlu1 %487  ;;  %v687_v1 = vpack.c.bf16 %v672_v53, %v671_v54 }
  0xbc   : > { %v484_v0 = vpop.permute.xlu0 %483  ;;  %v1130_v2 = vpop.eup %1129  ;;  %v1453_v3 = vadd.f32 %v1397_v43, %v546_v56  ;;  %v538_v51 = vmul.f32 %v1388_v36, %v488_v63  ;;  %v680_v8 = vmul.f32 %v1128_v58, %v1414_v61 }
  0xbd   : > { %v1456_v4 = vadd.f32 %v1399_v44, %v545_v57  ;;  %v537_v52 = vmul.f32 %v1388_v36, %v484_v0  ;;  %v1132_v5 = vpop.eup %1131  ;;  %1137 = vrcp.f32 %v626_v59  ;;  %1034 = vmatprep.mubr.msk.bf16.mxu0 %vm718_vm0, %v687_v1  ;;  %v679_v7 = vmul.f32 %v1130_v2, %v1417_v62 }
  0xbe   : > { %v1134_v9 = vpop.eup %1133  ;;  %v625_v10 = vadd.f32 1.0, %v1132_v5  ;;  %v554_v11 = vadd.f32 %v538_v51, %v518_v60  ;;  %v991_v14 = vmul.f32 -1.442695, %v1453_v3 }
  0xbf   : > { %v1136_v12 = vpop.eup %1135  ;;  %v634_v13 = vadd.f32 1.0, %v1134_v9  ;;  %v553_v15 = vadd.f32 %v537_v52, %v517_v6  ;;  %v366_v16 = vpop.permute.xlu1 %365  ;;  %v691_v20 = vpack.c.bf16 %v680_v8, %v679_v7  ;;  %v990_v22 = vmul.f32 -1.442695, %v1456_v4 }
  0xc0   : > { %v362_v17 = vpop.permute.xlu0 %361  ;;  %1139 = vrcp.f32 %v625_v10  ;;  %v633_v21 = vadd.f32 1.0, %v1136_v12  ;;  %v1467_v23 = vadd.f32 %v1397_v43, %v554_v11  ;;  %v512_v30 = vmul.f32 %v1386_v35, %v366_v16 }
  0xc1   : > { %1141 = vrcp.f32 %v634_v13  ;;  %v1470_v61 = vadd.f32 %v1399_v44, %v553_v15  ;;  %1042 = vmatprep.mubr.msk.bf16.mxu1 %vm718_vm0, %v691_v20  ;;  %v511_v31 = vmul.f32 %v1386_v35, %v362_v17 }
  0xc2   : > { %1143 = vrcp.f32 %v633_v21  ;;  %v999_v62 = vmul.f32 -1.442695, %v1467_v23 }
  0xc3   : > { %1145 = vpow2.f32 %v991_v14  ;;  %v998_v24 = vmul.f32 -1.442695, %v1470_v61  ;;  %v410_v25 = vpop.permute.xlu1 %409 }
  0xc4   : > { %v406_v26 = vpop.permute.xlu0 %405  ;;  %1147 = vpow2.f32 %v990_v22  ;;  %v520_v46 = vmul.f32 %v1386_v35, %v410_v25 }
  0xc5   : > { %1149 = vpow2.f32 %v999_v62  ;;  %v519_v57 = vmul.f32 %v1386_v35, %v406_v26 }
  0xc6   : > { %1151 = vpow2.f32 %v998_v24 }
  0xc7   : > { %v1138_v27 = vpop.eup %1137  ;;  %v455_v28 = vpop.permute.xlu1 %454 }
  0xc8   : > { %v451_v29 = vpop.permute.xlu0 %450  ;;  %v532_v32 = vmul.f32 %v1388_v36, %v455_v28  ;;  %v674_v38 = vmul.f32 %v1138_v27, %v1427_v18 }
  0xc9   : > { %v531_v37 = vmul.f32 %v1388_v36, %v451_v29 }
  0xca   : > { %v1140_v39 = vpop.eup %1139  ;;  %v548_v40 = vadd.f32 %v532_v32, %v512_v30 }
  0xcb   : > { %v547_v41 = vadd.f32 %v531_v37, %v511_v31  ;;  %v1142_v42 = vpop.eup %1141  ;;  %v673_v45 = vmul.f32 %v1140_v39, %v1430_v19  ;;  %v499_v47 = vpop.permute.xlu1 %498  ;;  %v1002_v37 = vld [vmem:[%s1603_s5] ss:$0 sm:$0xff] }
  0xcc   : > { %v495_v48 = vpop.permute.xlu0 %494  ;;  %v1144_v49 = vpop.eup %1143  ;;  %v682_v50 = vmul.f32 %v1142_v42, %v1438_v33  ;;  %v566_v53 = vadd.f32 %v1397_v43, %v548_v40  ;;  %v540_v55 = vmul.f32 %v1388_v36, %v499_v47 }
  0xcd   : > { %v565_v54 = vadd.f32 %v1399_v44, %v547_v41  ;;  %v1146_v18 = vpop.eup %1145  ;;  %v681_v56 = vmul.f32 %v1144_v49, %v1441_v34  ;;  %v539_v19 = vmul.f32 %v1388_v36, %v495_v48  ;;  %v688_v58 = vpack.c.bf16 %v674_v38, %v673_v45 }
  0xce   : > { %v1148_v59 = vpop.eup %1147  ;;  %v628_v60 = vadd.f32 1.0, %v1146_v18  ;;  %v556_v63 = vadd.f32 %v540_v55, %v520_v46  ;;  %v993_v5 = vmul.f32 -1.442695, %v566_v53 }
  0xcf   : > { %v1150_v0 = vpop.eup %1149  ;;  %v627_v1 = vadd.f32 1.0, %v1148_v59  ;;  %v555_v33 = vadd.f32 %v539_v19, %v519_v57  ;;  %1035 = vmatmul.mubr.msk.bf16.vlgmr.msra.gmra.mrb[0].mxu0 %vm718_vm0, %v688_v58  ;;  %v692_v2 = vpack.c.bf16 %v682_v50, %v681_v56  ;;  %v992_v6 = vmul.f32 -1.442695, %v565_v54 }
  0xd0   : > { %v1152_v51 = vpop.eup %1151  ;;  %1153 = vrcp.f32 %v628_v60  ;;  %v636_v52 = vadd.f32 1.0, %v1150_v0  ;;  %v574_v34 = vadd.f32 %v1397_v43, %v556_v63 }
  0xd1   : > { %1155 = vrcp.f32 %v627_v1  ;;  %v635_v35 = vadd.f32 1.0, %v1152_v51  ;;  %v573_v36 = vadd.f32 %v1399_v44, %v555_v33  ;;  %1043 = vmatmul.mubr.msk.bf16.vlgmr.msra.gmra.mrb[0].mxu1 %vm718_vm0, %v692_v2 }
  0xd2   : > { %1157 = vrcp.f32 %v636_v52  ;;  %v1001_v7 = vmul.f32 -1.442695, %v574_v34 }
  0xd3   : > { %1159 = vrcp.f32 %v635_v35  ;;  %v1000_v8 = vmul.f32 -1.442695, %v573_v36 }
  0xd4   : > { %1161 = vpow2.f32 %v993_v5 }
  0xd5   : > { %1163 = vpow2.f32 %v992_v6 }
  0xd6   : > { %1165 = vpow2.f32 %v1001_v7 }
  0xd7   : > { %1167 = vpow2.f32 %v1000_v8 }
  0xda   : > { %v1154_v9 = vpop.eup %1153 }
  0xdb   : > { %v1156_v10 = vpop.eup %1155  ;;  %v676_v11 = vmul.f32 %v1154_v9, %v1453_v3 }
  0xdc   : > { %v1158_v43 = vpop.eup %1157  ;;  %v675_v12 = vmul.f32 %v1156_v10, %v1456_v4 }
  0xdd   : > { %v1160_v13 = vpop.eup %1159  ;;  %v684_v44 = vmul.f32 %v1158_v43, %v1467_v23 }
  0xde   : > { %v1162_v14 = vpop.eup %1161  ;;  %v683_v15 = vmul.f32 %v1160_v13, %v1470_v61  ;;  %v689_v16 = vpack.c.bf16 %v676_v11, %v675_v12 }
  0xdf   : > { %v1164_v17 = vpop.eup %1163  ;;  %v630_v20 = vadd.f32 1.0, %v1162_v14 }
  0xe0   : > { %v1166_v21 = vpop.eup %1165  ;;  %v629_v22 = vadd.f32 1.0, %v1164_v17  ;;  %1038 = vmatprep.mubr.msk.bf16.mxu0 %vm718_vm0, %v689_v16  ;;  %v693_v62 = vpack.c.bf16 %v684_v44, %v683_v15 }
  0xe1   : > { %v1168_v24 = vpop.eup %1167  ;;  %1169 = vrcp.f32 %v630_v20  ;;  %v638_v3 = vadd.f32 1.0, %v1166_v21 }
  0xe2   : > { %1171 = vrcp.f32 %v629_v22  ;;  %v637_v25 = vadd.f32 1.0, %v1168_v24  ;;  %1046 = vmatprep.mubr.msk.bf16.mxu1 %vm718_vm0, %v693_v62 }
  0xe3   : > { %1173 = vrcp.f32 %v638_v3 }
  0xe4   : > { %1175 = vrcp.f32 %v637_v25 }
  0xeb   : > { %v1170_v4 = vpop.eup %1169 }
  0xec   : > { %v1172_v23 = vpop.eup %1171  ;;  %v678_v61 = vmul.f32 %v1170_v4, %v566_v53 }
  0xed   : > { %v1174_v26 = vpop.eup %1173  ;;  %v677_v27 = vmul.f32 %v1172_v23, %v565_v54 }
  0xee   : > { %v1176_v28 = vpop.eup %1175  ;;  %v686_v29 = vmul.f32 %v1174_v26, %v574_v34 }
  0xef   : > { %v685_v30 = vmul.f32 %v1176_v28, %v573_v36  ;;  %v690_v31 = vpack.c.bf16 %v678_v61, %v677_v27 }
  0xf1   : > { %1039 = vmatmul.mubr.msk.bf16.gmra.mrb[4].mxu0 %vm718_vm0, %v690_v31  ;;  %v694_v32 = vpack.c.bf16 %v686_v29, %v685_v30 }
  0xf3   : > { %1047 = vmatmul.mubr.msk.bf16.gmra.mrb[4].mxu1 %vm718_vm0, %v694_v32 }
 0x1a2   : > { %v1036_v38 = vpop.f32.mrb[0].mxu0 }
 0x1a3   : > { %v786_v39 = vadd.f32 %v1036_v38, %v1002_v37  ;;  %v777_v40 = vpop.f32.mrb[1].mxu0 }
 0x1a4   : > { %v778_v41 = vadd.f32 %v1002_v37, %v777_v40  ;;  %v1037_v42 = vpop.f32.mrb[2].mxu0  ;;  %v1044_v45 = vpop.f32.mrb[0].mxu1 }
 0x1a5   : > { %842 = vst.msk [vmem:[%s1507_s19 + $0x10] sm:$0xff] %vm718_vm0, %v786_v39  ;;  %v789_v46 = vadd.f32 %v1037_v42, %v1002_v37  ;;  %v780_v47 = vpop.f32.mrb[3].mxu0  ;;  %v818_v48 = vadd.f32 %v1044_v45, %v1002_v37  ;;  %v809_v49 = vpop.f32.mrb[1].mxu1 }
 0x1a6   : > { %840 = vst.msk [vmem:[%s1507_s19] sm:$0xff] %vm718_vm0, %v778_v41  ;;  %v781_v50 = vadd.f32 %v1002_v37, %v780_v47  ;;  %v810_v53 = vadd.f32 %v1002_v37, %v809_v49  ;;  %v1045_v54 = vpop.f32.mrb[2].mxu1 }
 0x1a7   : > { %843 = vst.msk [vmem:[%s1507_s19 + $0x18] sm:$0xff] %vm718_vm0, %v789_v46  ;;  %850 = vst.msk [vmem:[%s1507_s19 + $0x50] sm:$0xff] %vm718_vm0, %v818_v48  ;;  %v821_v55 = vadd.f32 %v1045_v54, %v1002_v37  ;;  %v812_v18 = vpop.f32.mrb[3].mxu1 }
 0x1a8   : > { %841 = vst.msk [vmem:[%s1507_s19 + $0x8] sm:$0xff] %vm718_vm0, %v781_v50  ;;  %848 = vst.msk [vmem:[%s1507_s19 + $0x40] sm:$0xff] %vm718_vm0, %v810_v53  ;;  %v813_v56 = vadd.f32 %v1002_v37, %v812_v18 }
 0x1a9   : > { %851 = vst.msk [vmem:[%s1507_s19 + $0x58] sm:$0xff] %vm718_vm0, %v821_v55 }
 0x1aa   : > { %849 = vst.msk [vmem:[%s1507_s19 + $0x48] sm:$0xff] %vm718_vm0, %v813_v56 }
 0x1c4   : > { %v1040_v57 = vpop.f32.mrb[4].mxu0 }
 0x1c5   : > { %v802_v19 = vadd.f32 %v1040_v57, %v1002_v37  ;;  %v793_v58 = vpop.f32.mrb[5].mxu0 }
 0x1c6   : > { %v794_v59 = vadd.f32 %v1002_v37, %v793_v58  ;;  %v1041_v60 = vpop.f32.mrb[6].mxu0  ;;  %v1048_v63 = vpop.f32.mrb[4].mxu1 }
 0x1c7   : > { %846 = vst.msk [vmem:[%s1507_s19 + $0x30] sm:$0xff] %vm718_vm0, %v802_v19  ;;  %v805_v0 = vadd.f32 %v1041_v60, %v1002_v37  ;;  %v796_v1 = vpop.f32.mrb[7].mxu0  ;;  %v834_v33 = vadd.f32 %v1048_v63, %v1002_v37  ;;  %v825_v2 = vpop.f32.mrb[5].mxu1 }
 0x1c8   : > { %844 = vst.msk [vmem:[%s1507_s19 + $0x20] sm:$0xff] %vm718_vm0, %v794_v59  ;;  %v797_v51 = vadd.f32 %v1002_v37, %v796_v1  ;;  %v826_v52 = vadd.f32 %v1002_v37, %v825_v2  ;;  %v1049_v5 = vpop.f32.mrb[6].mxu1 }
 0x1c9   : > { %847 = vst.msk [vmem:[%s1507_s19 + $0x38] sm:$0xff] %vm718_vm0, %v805_v0  ;;  %854 = vst.msk [vmem:[%s1507_s19 + $0x70] sm:$0xff] %vm718_vm0, %v834_v33  ;;  %v837_v34 = vadd.f32 %v1049_v5, %v1002_v37  ;;  %v828_v35 = vpop.f32.mrb[7].mxu1 }
 0x1ca   : > { %845 = vst.msk [vmem:[%s1507_s19 + $0x28] sm:$0xff] %vm718_vm0, %v797_v51  ;;  %852 = vst.msk [vmem:[%s1507_s19 + $0x60] sm:$0xff] %vm718_vm0, %v826_v52  ;;  %v829_v6 = vadd.f32 %v1002_v37, %v828_v35 }
 0x1cb   : > { %855 = vst.msk [vmem:[%s1507_s19 + $0x78] sm:$0xff] %vm718_vm0, %v837_v34 }
 0x1cc   : > { %853 = vst.msk [vmem:[%s1507_s19 + $0x68] sm:$0xff] %vm718_vm0, %v829_v6 }
 0x1cd   : > { %1190 = shalt.err (!%p1187_p5)
}
 0x1ce   : > { %s1191_s11 = scalar_lea.hbm %s1538_s30, 2048  ;;  %s1195_s18 = scalar_lea.hbm %s1604_s6, 4096 }
 0x1cf   : > { %p1192_p6 = scmp.ne.s32.totalorder %s1538_s30, %s1191_s11  ;;  %p1196_p10 = scmp.lt.u32.totalorder %s1538_s30, %s1604_s6 }
 0x1d0   : > { %p1197_p11 = scmp.lt.u32.totalorder %s1195_s18, %s1191_s11  ;;  %p1199_p13 = scmp.lt.u32.totalorder %s1191_s11, %s1538_s30 }
 0x1d1   : > { %p1193_p7 = pnand %p1192_p6, %p1335_p4 }
 0x1d2   : > { %p1198_p12 = por %p1197_p11, %p1196_p10 }
 0x1d3   : > { %p1194_p9 = pneg %p1193_p7 }
 0x1d4   : > { %p1200_p0 = por %p1199_p13, %p1198_p12 }
 0x1d6   : > { %p1201_p1 = pnand %p1200_p0, %p1194_p9 }
 0x1d8   : > { %1204 = shalt.err (!%p1201_p1)
}
 0x1d9   : > { %s1258_s24 = smov 128   ;;  %s1259_s28 = smov 8  }
 0x1da   : > { %1054 = dma.vmem_to_hbm [thread:$0]  (%p1335_p4), %s1540_s27, 2048, %s1538_s30, %s1552_s8, %s1258_s24, %s1258_s24, %s1259_s28  }
 0x1db PF: > { %p1060_p2 = scmp.ge.s32.totalorder %s1255_s26, 2  ;;  %s888_s12 = sand.u32 1, %s1235_s21  }
 0x1dc   : > { %s889_s13 = scalar_lea.sflag [#allocation3], %s888_s12 }
 0x1dd   : > { %p1057_p3 = pnand %p1060_p2, %p1342_p8 }
 0x1df   : > { %1230 = dma.done.wait (!%p1057_p3), %s889_s13, 2048  }
 0x1e0   : > { %1232 = vsyncadd (!%p1057_p3), %s889_s13, 4294965248  ;;  %s19_s26 = sadd.s32 1, %s1255_s26   ;;  %s1607_s21 = smov %s1239_s22 }
 0x1e1   : > { %p16_p5 = scmp.ge.s32.totalorder %s19_s26, 4   ;;  %s1608_s22 = smov %s1243_s23 }
 0x1e2   : > { %s1609_s23 = smov %s1348_s10  ;;  %s1610_s24 = smov %s1251_s25 }
 0x1e3   : > { %s1611_s25 = smov %s1613_s29  ;;  %18 = sbr.rel (!%p16_p5) target bundleno = 4 (0x4), region = 85 }
 0x1ea   :  { %894 = vsyncpa [#allocation3], 1 }
 0x1eb   :  { %896 = vsyncpa [#allocation3 + $0x1], 1 }

</bundles_post_ra>
